<compile_context>
chip_gen: v6e
topology: v6e:2x2x1
jax: 0.10.0
libtpu: 0.0.40
codegen_flags: <defaults>
</compile_context>

<pallas_src>
import functools
import math

import jax
import jax.numpy as jnp
import numpy as np
from jax import lax
from jax.experimental import pallas as pl
from jax.experimental.pallas import tpu as pltpu

# NT contraction: dot(q (M,K), k (N,K)) -> (M,N), no explicit transpose.
_NT_DIMS = (((1,), (1,)), ((), ()))


def _pick_block(dim, target, align):
    """Largest tile <= target that divides `dim` and is a multiple of `align`;
    falls back to the full dimension (always a legal, full-extent block)."""
    if dim <= target:
        return dim
    cand = (target // align) * align
    while cand >= align:
        if dim % cand == 0:
            return cand
        cand -= align
    return dim


# ---------------------------------------------------------------------------
# Tiled linear kernel:  y = x @ Wt + b      (Wt already transposed: (Din, Dout))
# ---------------------------------------------------------------------------
def _linear_kernel(x_ref, w_ref, b_ref, o_ref, acc_ref):
    k = pl.program_id(2)

    @pl.when(k == 0)
    def _():
        acc_ref[...] = jnp.zeros_like(acc_ref)

    acc_ref[...] += jnp.dot(x_ref[...], w_ref[...],
                            preferred_element_type=jnp.float32)

    @pl.when(k == pl.num_programs(2) - 1)
    def _():
        o_ref[...] = (acc_ref[...] + b_ref[...].astype(jnp.float32)).astype(o_ref.dtype)


def pallas_linear(x2d, wt, b):
    """x2d: (M, Din); wt: (Din, Dout) pre-transposed; b: (Dout,) -> (M, Dout)."""
    M, Din = x2d.shape
    Dout = wt.shape[1]
    tm = _pick_block(M, 256, 8)
    tn = _pick_block(Dout, 256, 128)
    tk = _pick_block(Din, 512, 128)
    grid = (M // tm, Dout // tn, Din // tk)
    return pl.pallas_call(
        _linear_kernel,
        out_shape=jax.ShapeDtypeStruct((M, Dout), x2d.dtype),
        grid=grid,
        in_specs=[
            pl.BlockSpec((tm, tk), lambda i, j, k: (i, k)),
            pl.BlockSpec((tk, tn), lambda i, j, k: (k, j)),
            pl.BlockSpec((1, tn), lambda i, j, k: (0, j)),
        ],
        out_specs=pl.BlockSpec((tm, tn), lambda i, j, k: (i, j)),
        scratch_shapes=[pltpu.VMEM((tm, tn), jnp.float32)],
        compiler_params=pltpu.CompilerParams(
            dimension_semantics=("parallel", "parallel", "arbitrary"),
            vmem_limit_bytes=32 * 1024 * 1024),
    )(x2d, wt, b.reshape(1, Dout))


# ---------------------------------------------------------------------------
# Flash-style multi-head attention kernel.
# grid = (batch, q-blocks, k-blocks); all heads handled per step.
# Blocks: q:(Tq_blk, D)  k/v:(Tk_blk, D)  mask:(Tq_blk, Tk_blk)  out:(Tq_blk, D)
# Scratch: m,l:(Tq_blk, H) f32, acc:(Tq_blk, D) f32.
# ---------------------------------------------------------------------------
def _mha_flash_kernel(n_heads, scale, dropout_p, has_mask,
                      seed_ref, q_ref, k_ref, v_ref, *rest):
    if has_mask:
        mask_ref, o_ref, m_sc, l_sc, acc_sc = rest
    else:
        o_ref, m_sc, l_sc, acc_sc = rest

    b = pl.program_id(0)
    qi = pl.program_id(1)
    ki = pl.program_id(2)
    nk = pl.num_programs(2)

    @pl.when(ki == 0)
    def _():
        m_sc[...] = jnp.full_like(m_sc, -jnp.inf)
        l_sc[...] = jnp.zeros_like(l_sc)
        acc_sc[...] = jnp.zeros_like(acc_sc)

    tq, d_model = q_ref.shape
    dh = d_model // n_heads

    q = q_ref[...]
    q = q * jnp.asarray(scale, q.dtype)      # scale Q (Tq*D mults), not the scores
    k = k_ref[...]
    v = v_ref[...]

    if has_mask:
        # int8 mask -> bool; one (Tq_blk, Tk_blk) decode shared by every head.
        invalid = mask_ref[...].astype(jnp.int32) == 0

    if dropout_p > 0.0:
        # Distinct stream per (batch, q-block, k-block); heads advance it.
        nq = pl.num_programs(1)
        pltpu.prng_seed(seed_ref[0] + (b * nq + qi) * nk + ki)
        keep_scale = jnp.float32(1.0 / (1.0 - dropout_p))
        thresh = jnp.uint32(min(int(dropout_p * float(2 ** 32)), 2 ** 32 - 1))

    for h in range(n_heads):                 # static unrolled loop over heads
        sl = slice(h * dh, (h + 1) * dh)
        q_h = q[:, sl]                       # (Tq_blk, dh)
        k_h = k[:, sl]                       # (Tk_blk, dh)
        v_h = v[:, sl]                       # (Tk_blk, dh)

        # scores in input dtype on the MXU (NT feed, no VMEM transpose), f32 acc
        s = lax.dot_general(q_h, k_h, _NT_DIMS,
                            preferred_element_type=jnp.float32)
        if has_mask:
            s = jnp.where(invalid, jnp.float32(-1.0e9), s)

        m_prev = m_sc[:, h:h + 1]                                  # (Tq_blk, 1)
        m_new = jnp.maximum(m_prev, jnp.max(s, axis=-1, keepdims=True))
        alpha = jnp.exp(m_prev - m_new)
        p = jnp.exp(s - m_new)                                     # (Tq_blk, Tk_blk)

        # running softmax denominator uses the un-dropped probabilities
        l_sc[:, h:h + 1] = alpha * l_sc[:, h:h + 1] + jnp.sum(p, axis=-1, keepdims=True)

        if dropout_p > 0.0:  # static gate; matches torch.dropout(train=True) semantics
            bits = pltpu.bitcast(pltpu.prng_random_bits(p.shape), jnp.uint32)
            p = jnp.where(bits >= thresh, p * keep_scale, jnp.float32(0.0))

        pv = jnp.dot(p.astype(v_h.dtype), v_h, preferred_element_type=jnp.float32)
        acc_sc[:, sl] = alpha * acc_sc[:, sl] + pv
        m_sc[:, h:h + 1] = m_new

    @pl.when(ki == nk - 1)
    def _():
        # Finalize: normalize and emit a lane-dense (Tq_blk, D) slab.
        # (Full-precision reciprocal kept to stay tightly within the reference
        #  tolerance — runs once per q-block, off the hot Tk loop.)
        for h in range(n_heads):
            sl = slice(h * dh, (h + 1) * dh)
            inv_l = pl.reciprocal(l_sc[:, h:h + 1], approx=False)
            o_ref[:, sl] = (acc_sc[:, sl] * inv_l).astype(o_ref.dtype)


# ---------------------------------------------------------------------------
# Parameter prep (one-time): pre-transpose nn.Linear weights, build fused QKV.
# ---------------------------------------------------------------------------
def prepare_params(raw):
    p = {
        "wq_t": jnp.asarray(raw["wq_w"]).T, "wq_b": jnp.asarray(raw["wq_b"]),
        "wk_t": jnp.asarray(raw["wk_w"]).T, "wk_b": jnp.asarray(raw["wk_b"]),
        "wv_t": jnp.asarray(raw["wv_w"]).T, "wv_b": jnp.asarray(raw["wv_b"]),
        "wo_t": jnp.asarray(raw["wo_w"]).T, "wo_b": jnp.asarray(raw["wo_b"]),
    }
    p["wqkv_t"] = jnp.concatenate([p["wq_t"], p["wk_t"], p["wv_t"]], axis=1)
    p["wqkv_b"] = jnp.concatenate([p["wq_b"], p["wk_b"], p["wv_b"]], axis=0)
    return p


# ---------------------------------------------------------------------------
# Full MultiHeadAttention forward.
# ---------------------------------------------------------------------------
def multi_head_attention(Q, K, V, params, mask=None, *, n_heads,
                         dropout_p=0.0, seed=0):
    B, Tq, D = Q.shape
    Tk = K.shape[1]
    assert D % n_heads == 0
    dh = D // n_heads

    # ---- projections ------------------------------------------------------
    if (Q is K) and (K is V):
        # self-attention: fused QKV (one x DMA, MXU N dimension = 3*D)
        qkv = pallas_linear(Q.reshape(B * Tq, D), params["wqkv_t"], params["wqkv_b"])
        qkv = qkv.reshape(B, Tq, 3 * D)
        q2, k2, v2 = qkv[..., :D], qkv[..., D:2 * D], qkv[..., 2 * D:]
    else:
        q2 = pallas_linear(Q.reshape(B * Tq, D), params["wq_t"], params["wq_b"]).reshape(B, Tq, D)
        k2 = pallas_linear(K.reshape(B * Tk, D), params["wk_t"], params["wk_b"]).reshape(B, Tk, D)
        v2 = pallas_linear(V.reshape(B * Tk, D), params["wv_t"], params["wv_b"]).reshape(B, Tk, D)

    # ---- attention (no head transposes; flash tiling over the src axis) ----
    tq_blk = _pick_block(Tq, 128, 32)    # 32-aligned: legal sublane block also for the int8 mask
    tk_blk = _pick_block(Tk, 256, 128)   # 128-aligned: lane dim of the mask block
    grid = (B, Tq // tq_blk, Tk // tk_blk)

    has_mask = mask is not None
    in_specs = [
        pl.BlockSpec((None, tq_blk, D), lambda b, qi, ki, s: (b, qi, 0)),
        pl.BlockSpec((None, tk_blk, D), lambda b, qi, ki, s: (b, ki, 0)),
        pl.BlockSpec((None, tk_blk, D), lambda b, qi, ki, s: (b, ki, 0)),
    ]
    inputs = [q2, k2, v2]
    if has_mask:
        in_specs.append(
            pl.BlockSpec((None, None, tq_blk, tk_blk),
                         lambda b, qi, ki, s: (b, 0, qi, ki)))
        inputs.append(mask.astype(jnp.int8))

    kernel = functools.partial(
        _mha_flash_kernel, int(n_heads), float(1.0 / math.sqrt(dh)),
        float(dropout_p), has_mask)
    seed_arr = jnp.array([seed], dtype=jnp.int32)

    attn = pl.pallas_call(
        kernel,
        out_shape=jax.ShapeDtypeStruct((B, Tq, D), Q.dtype),
        grid_spec=pltpu.PrefetchScalarGridSpec(
            num_scalar_prefetch=1,
            grid=grid,
            in_specs=in_specs,
            out_specs=pl.BlockSpec((None, tq_blk, D),
                                   lambda b, qi, ki, s: (b, qi, 0)),
            scratch_shapes=[
                pltpu.VMEM((tq_blk, n_heads), jnp.float32),   # running max m
                pltpu.VMEM((tq_blk, n_heads), jnp.float32),   # running sum l
                pltpu.VMEM((tq_blk, D), jnp.float32),         # output accumulator
            ]),
        compiler_params=pltpu.CompilerParams(
            dimension_semantics=("parallel", "parallel", "arbitrary"),
            vmem_limit_bytes=32 * 1024 * 1024),
    )(seed_arr, *inputs)

    # ---- output projection -------------------------------------------------
    out = pallas_linear(attn.reshape(B * Tq, D), params["wo_t"], params["wo_b"])
    return out.reshape(B, Tq, D)


# ---------------------------------------------------------------------------
# Pure-JAX reference (deterministic, dropout_p == 0 path)
# ---------------------------------------------------------------------------
def reference_mha(Q, K, V, raw, mask, n_heads):
    B, Tq, D = Q.shape
    Tk = K.shape[1]
    dh = D // n_heads

    def lin(x, w, b):
        return x @ w.T + b

    q = lin(Q, raw["wq_w"], raw["wq_b"]).reshape(B, Tq, n_heads, dh).transpose(0, 2, 1, 3)
    k = lin(K, raw["wk_w"], raw["wk_b"]).reshape(B, Tk, n_heads, dh).transpose(0, 2, 1, 3)
    v = lin(V, raw["wv_w"], raw["wv_b"]).reshape(B, Tk, n_heads, dh).transpose(0, 2, 1, 3)

    scores = jnp.einsum("bhqd,bhkd->bhqk", q, k) / math.sqrt(dh)
    if mask is not None:
        scores = jnp.where(mask == 0, -1.0e9, scores)
    w = jax.nn.softmax(scores, axis=-1)
    heads = jnp.einsum("bhqk,bhkd->bhqd", w, v)
    concat = heads.transpose(0, 2, 1, 3).reshape(B, Tq, D)
    return lin(concat, raw["wo_w"], raw["wo_b"])


# ---------------------------------------------------------------------------
if __name__ == "__main__":
    def make_raw_params(key, D):
        ks = jax.random.split(key, 8)
        s = 0.05
        return {
            "wq_w": s * jax.random.normal(ks[0], (D, D), jnp.float32),
            "wq_b": s * jax.random.normal(ks[1], (D,), jnp.float32),
            "wk_w": s * jax.random.normal(ks[2], (D, D), jnp.float32),
            "wk_b": s * jax.random.normal(ks[3], (D,), jnp.float32),
            "wv_w": s * jax.random.normal(ks[4], (D, D), jnp.float32),
            "wv_b": s * jax.random.normal(ks[5], (D,), jnp.float32),
            "wo_w": s * jax.random.normal(ks[6], (D, D), jnp.float32),
            "wo_b": s * jax.random.normal(ks[7], (D,), jnp.float32),
        }

    def check(Q, K, V, raw, prep, mask, n_heads):
        out = multi_head_attention(Q, K, V, prep, mask=mask,
                                   n_heads=n_heads, dropout_p=0.0, seed=0)
        out = jax.block_until_ready(out)
        ref = reference_mha(Q, K, V, raw, mask, n_heads)
        assert out.shape == ref.shape, (out.shape, ref.shape)
        np.testing.assert_allclose(np.asarray(out), np.asarray(ref),
                                   rtol=1e-3, atol=1e-3)

    root = jax.random.PRNGKey(0)
    k1, k2, k3, k4, k5 = jax.random.split(root, 5)

    # --- case 1: small shapes, distinct Q/K/V, masked ----------------------
    B, Tq, Tk, D, H = 2, 8, 8, 32, 4
    raw1 = make_raw_params(k1, D)
    prep1 = prepare_params(raw1)
    Q1 = jax.random.normal(k2, (B, Tq, D), jnp.float32)
    K1 = jax.random.normal(k3, (B, Tk, D), jnp.float32)
    V1 = jax.random.normal(k4, (B, Tk, D), jnp.float32)
    mask1 = np.ones((B, 1, Tq, Tk), dtype=np.int32)
    mask1[1, :, :, -2:] = 0                       # block last 2 src positions, batch 1
    check(Q1, K1, V1, raw1, prep1, jnp.asarray(mask1), H)

    # --- case 2: self-attention (exercises the fused QKV projection), no mask
    check(Q1, Q1, Q1, raw1, prep1, None, H)

    # --- case 3: larger shapes exercising the tiled linears and the flash
    #             k-block accumulation loop (grid = (2, 4, 2)) ---------------
    B3, S3, D3, H3 = 2, 512, 128, 4
    raw3 = make_raw_params(k5, D3)
    prep3 = prepare_params(raw3)
    kq3, kk3, kv3 = jax.random.split(jax.random.fold_in(root, 7), 3)
    Q3 = jax.random.normal(kq3, (B3, S3, D3), jnp.float32)
    K3 = jax.random.normal(kk3, (B3, S3, D3), jnp.float32)
    V3 = jax.random.normal(kv3, (B3, S3, D3), jnp.float32)
    mask3 = np.ones((B3, 1, S3, S3), dtype=np.int32)
    mask3[1, :, :, -64:] = 0                      # block last 64 src positions, batch 1
    check(Q3, K3, V3, raw3, prep3, jnp.asarray(mask3), H3)

    # TODO(synk): dropout_p > 0 uses the TPU hardware PRNG; it is
    # distribution-equivalent to torch.dropout but not bit-identical, so it is
    # not asserted against the reference here.
    print("KERNEL_OK")
</pallas_src>

<mosaic_0001>
module attributes {stable_mosaic.version = 11 : i64} {
  func.func @_linear_kernel(%arg0: i32, %arg1: i32, %arg2: i32, %arg3: memref<16x32xf32, #tpu.memory_space<vmem>>, %arg4: memref<32x32xf32, #tpu.memory_space<vmem>>, %arg5: memref<1x32xf32, #tpu.memory_space<vmem>>, %arg6: memref<16x32xf32, #tpu.memory_space<vmem>>, %arg7: memref<16x32xf32, #tpu.memory_space<vmem>>) attributes {dimension_semantics = [#tpu.dimension_semantics<parallel>, #tpu.dimension_semantics<parallel>, #tpu.dimension_semantics<arbitrary>], iteration_bounds = array<i64: 1, 1, 1>, scalar_prefetch = 0 : i64, scratch_operands = 1 : i64, tpu.core_type = #tpu.core_type<tc>, window_params = [{transform_indices = @transform_0, window_bounds = array<i64: 16, 32>}, {transform_indices = @transform_1, window_bounds = array<i64: 32, 32>}, {transform_indices = @transform_2, window_bounds = array<i64: 1, 32>}, {transform_indices = @transform_3, window_bounds = array<i64: 16, 32>}]} {
    %c0_i32 = arith.constant 0 : i32
    %0 = arith.cmpi eq, %arg2, %c0_i32 : i32
    %1 = arith.extui %0 : i1 to i32
    %c0_i32_0 = arith.constant 0 : i32
    %2 = arith.cmpi ne, %1, %c0_i32_0 : i32
    scf.if %2 {
      %cst_10 = arith.constant 0.000000e+00 : f32
      %12 = vector.broadcast %cst_10 : f32 to vector<16x32xf32>
      %c0_11 = arith.constant 0 : index
      %c0_12 = arith.constant 0 : index
      %13 = vector.load %arg7[%c0_11, %c0_12] : memref<16x32xf32, #tpu.memory_space<vmem>>, vector<16x32xf32>
      tpu.vector_store %arg7[%c0_11, %c0_12], %12 {strides = array<i32>} : memref<16x32xf32, #tpu.memory_space<vmem>>, vector<16x32xf32>,
    } else {
    }
    %c0 = arith.constant 0 : index
    %c0_1 = arith.constant 0 : index
    %3 = vector.load %arg7[%c0, %c0_1] : memref<16x32xf32, #tpu.memory_space<vmem>>, vector<16x32xf32>
    %c0_2 = arith.constant 0 : index
    %c0_3 = arith.constant 0 : index
    %4 = vector.load %arg3[%c0_2, %c0_3] : memref<16x32xf32, #tpu.memory_space<vmem>>, vector<16x32xf32>
    %c0_4 = arith.constant 0 : index
    %c0_5 = arith.constant 0 : index
    %5 = vector.load %arg4[%c0_4, %c0_5] : memref<32x32xf32, #tpu.memory_space<vmem>>, vector<32x32xf32>
    %cst = arith.constant dense<0.000000e+00> : vector<16x32xf32>
    %6 = tpu.matmul %4, %5, %cst {dimension_numbers = #tpu.dot_dimension_numbers<[1], [0], [0], [1], [0, 0, 1, 1], [], []>} : vector<16x32xf32>, vector<32x32xf32>, vector<16x32xf32> -> vector<16x32xf32>
    %7 = arith.addf %3, %6 : vector<16x32xf32>
    %c0_6 = arith.constant 0 : index
    %c0_7 = arith.constant 0 : index
    %8 = vector.load %arg7[%c0_6, %c0_7] : memref<16x32xf32, #tpu.memory_space<vmem>>, vector<16x32xf32>
    tpu.vector_store %arg7[%c0_6, %c0_7], %7 {strides = array<i32>} : memref<16x32xf32, #tpu.memory_space<vmem>>, vector<16x32xf32>,
    %c0_i32_8 = arith.constant 0 : i32
    %9 = arith.cmpi eq, %arg2, %c0_i32_8 : i32
    %10 = arith.extui %9 : i1 to i32
    %c0_i32_9 = arith.constant 0 : i32
    %11 = arith.cmpi ne, %10, %c0_i32_9 : i32
    scf.if %11 {
      %c0_10 = arith.constant 0 : index
      %c0_11 = arith.constant 0 : index
      %12 = vector.load %arg7[%c0_10, %c0_11] : memref<16x32xf32, #tpu.memory_space<vmem>>, vector<16x32xf32>
      %c0_12 = arith.constant 0 : index
      %c0_13 = arith.constant 0 : index
      %13 = vector.load %arg5[%c0_12, %c0_13] : memref<1x32xf32, #tpu.memory_space<vmem>>, vector<1x32xf32>
      %14 = vector.broadcast %13 : vector<1x32xf32> to vector<16x32xf32>
      %15 = arith.addf %12, %14 : vector<16x32xf32>
      %c0_14 = arith.constant 0 : index
      %c0_15 = arith.constant 0 : index
      %16 = vector.load %arg6[%c0_14, %c0_15] : memref<16x32xf32, #tpu.memory_space<vmem>>, vector<16x32xf32>
      tpu.vector_store %arg6[%c0_14, %c0_15], %15 {strides = array<i32>} : memref<16x32xf32, #tpu.memory_space<vmem>>, vector<16x32xf32>,
    } else {
    }
    return
  }
  func.func @transform_0(%arg0: i32, %arg1: i32, %arg2: i32) -> (i32, i32) {
    %c0_i32 = arith.constant 0 : i32
    return %arg0, %arg2 : i32, i32
  }
  func.func @transform_1(%arg0: i32, %arg1: i32, %arg2: i32) -> (i32, i32) {
    %c0_i32 = arith.constant 0 : i32
    return %arg2, %arg1 : i32, i32
  }
  func.func @transform_2(%arg0: i32, %arg1: i32, %arg2: i32) -> (i32, i32) {
    %c0_i32 = arith.constant 0 : i32
    %c0_i32_0 = arith.constant 0 : i32
    return %c0_i32, %arg1 : i32, i32
  }
  func.func @transform_3(%arg0: i32, %arg1: i32, %arg2: i32) -> (i32, i32) {
    %c0_i32 = arith.constant 0 : i32
    return %arg0, %arg1 : i32, i32
  }
}

</mosaic_0001>

<bundles_post_ra>
// kernel: tpu_custom_call.1
= control target key start
LH: loop header
LB: loop body
LE: loop exit
PB: predicated region body
PF: predicated region fallthrough
CT: control target
= control target key end

     0   :  { %8 = vsyncpa [#allocation4], 0  ;;  %s325_s0 = inlined_call_operand.hbm [shape: f32[16,32], index: 0, kind: input, shape index: {}]   ;;  %s326_s1 = inlined_call_operand.hbm [shape: f32[32,32], index: 1, kind: input, shape index: {}]   ;;  %s327_s2 = inlined_call_operand.vmem [shape: f32[1,32], index: 2, kind: input, shape index: {}]   ;;  %s328_s3 = inlined_call_operand.hbm [shape: f32[16,32], index: 3, kind: output, shape index: {}]  }
   0x1   :  { %9 = vsyncpa [#allocation7], 0 }
   0x2   :  { %10 = vsyncpa [#allocation5], 0  ;;  %s270_s12 = smov [#allocation3]  }
   0x3   :  { %s16_s13 = sshll.u32 %s270_s12, 4  ;;  %s17_s13 = int_to_ptr.vmem [resolvable:$true] %s16_s13 }
   0x4   :  { %s212_s14 = scalar_lea.vmem %s17_s13, 256  ;;  %p217_p1 = scmp.lt.s32.totalorder %s17_s13, %s17_s13 }
   0x5   :  { %p213_p0 = scmp.ne.s32.totalorder %s17_s13, %s212_s14  ;;  %p218_p2 = scmp.lt.s32.totalorder %s212_s14, %s212_s14 }
   0x7   :  { %p219_p3 = por %p218_p2, %p217_p1 }
   0x9   :  { %p220_p4 = pnand %p219_p3, %p213_p0 }
   0xb   :  { %223 = shalt.err (!%p220_p4)
}
   0xc   :  { %s271_s15 = smov 128   ;;  %s272_s16 = smov 8  }
   0xd   :  { %22 = dma.hbm_to_vmem [thread:$0]  %s325_s0, 256, %s17_s13, [#allocation4], %s271_s15, %s271_s15, %s272_s16  }
   0xe   :  { %s273_s19 = smov [#allocation6]  }
   0xf   :  { %s28_s20 = sshll.u32 %s273_s19, 4  ;;  %s29_s20 = int_to_ptr.vmem [resolvable:$true] %s28_s20 }
  0x10   :  { %s232_s21 = scalar_lea.vmem %s29_s20, 512  ;;  %p237_p6 = scmp.lt.s32.totalorder %s29_s20, %s29_s20 }
  0x11   :  { %p233_p5 = scmp.ne.s32.totalorder %s29_s20, %s232_s21  ;;  %p238_p7 = scmp.lt.s32.totalorder %s232_s21, %s232_s21 }
  0x13   :  { %p239_p8 = por %p238_p7, %p237_p6 }
  0x15   :  { %p240_p9 = pnand %p239_p8, %p233_p5 }
  0x17   :  { %243 = shalt.err (!%p240_p9)
}
  0x18   :  { %34 = dma.hbm_to_vmem [thread:$0]  %s326_s1, 512, %s29_s20, [#allocation7], %s271_s15, %s271_s15, %s272_s16  }
  0x19   :  { %264 = dma.done.wait [#allocation4], 256  }
  0x1a   :  { %265 = vsyncadd [#allocation4], 4294967040 }
  0x1b   :  { %266 = dma.done.wait [#allocation7], 512  }
  0x1c   :  { %267 = vsyncadd [#allocation7], 4294966784  ;;  %vm47_vm0 = vcmask 261120   ;;  %v274_v0 = vmov 0.0   ;;  %v57_v1 = vld [vmem:[#allocation6 + $0x18] sm:$0xff]  ;;  %v56_v2 = vld [vmem:[#allocation6 + $0x10] sm:$0xff] }
  0x1d   :  { %49 = vst.msk [vmem:[#allocation2 + $0x8] sm:$0xff] %vm47_vm0, %v274_v0  ;;  %48 = vst.msk [vmem:[#allocation2] sm:$0xff] %vm47_vm0, %v274_v0  ;;  %187 = vmatprep.subr.mxu0 %v57_v1  ;;  %v52_v3 = vld [vmem:[#allocation3] sm:$0xff]  ;;  %v55_v4 = vld [vmem:[#allocation6 + $0x8] sm:$0xff]  ;;  %s275_s24 = smov [#allocation8]  }
  0x1e   :  { %188 = vmatpush3.msra.mxu0 %v57_v1  ;;  %195 = vmatprep.mubr.msk.f32.mxu0 %vm47_vm0, %v52_v3  ;;  %v54_v5 = vld [vmem:[#allocation6] sm:$0xff]  ;;  %v53_v6 = vld [vmem:[#allocation3 + $0x8] sm:$0xff]  ;;  %s165_s25 = sshll.u32 %s275_s24, 4  ;;  %s166_s25 = int_to_ptr.vmem [resolvable:$true] %s165_s25 }
  0x1f   :  { %189 = vmatprep.subr.mxu0 %v56_v2  ;;  %v180_v13 = vld [vmem:[%s327_s2] ss:$0 sm:$0xff]  ;;  %s244_s26 = scalar_lea.vmem %s166_s25, 256  ;;  %p249_p11 = scmp.lt.s32.totalorder %s166_s25, %s166_s25 }
  0x20   :  { %190 = vmatpush3.msra.mxu0 %v56_v2  ;;  %p245_p10 = scmp.ne.s32.totalorder %s166_s25, %s244_s26  ;;  %p250_p12 = scmp.lt.s32.totalorder %s244_s26, %s244_s26 }
  0x21   :  { %191 = vmatprep.subr.mxu0 %v55_v4 }
  0x22   :  { %192 = vmatpush3.msra.mxu0 %v55_v4  ;;  %p251_p13 = por %p250_p12, %p249_p11 }
  0x23   :  { %193 = vmatprep.subr.mxu0 %v54_v5 }
  0x24   :  { %194 = vmatpush3.msra.mxu0 %v54_v5  ;;  %v51_v7 = vld [vmem:[#allocation2 + $0x8] sm:$0xff]  ;;  %v50_v9 = vld [vmem:[#allocation2] sm:$0xff]  ;;  %p252_p0 = pnand %p251_p13, %p245_p10 }
  0x25   :  { %196 = vmatmul.mubr.msk.f32.vlgmr.msra.gmra.mxu0 %vm47_vm0, %v53_v6 }
  0xe5   :  { %v197_v8 = vpop.f32.mrf.mxu0 }
  0xe6   :  { %v141_v10 = vadd.f32 %v197_v8, %v51_v7 }
  0xe7   :  { %v131_v11 = vpop.f32.mrf.mxu0 }
  0xe8   :  { %143 = vst.msk [vmem:[#allocation2 + $0x8] sm:$0xff] %vm47_vm0, %v141_v10  ;;  %v140_v12 = vadd.f32 %v131_v11, %v50_v9 }
  0xea   :  { %142 = vst.msk [vmem:[#allocation2] sm:$0xff] %vm47_vm0, %v140_v12 }
  0xef   :  { %v148_v14 = vld [vmem:[#allocation2 + $0x8] sm:$0xff] }
  0xf0   :  { %v157_v15 = vadd.f32 %v180_v13, %v148_v14 }
  0xf1   :  { %v147_v16 = vld [vmem:[#allocation2] sm:$0xff] }
  0xf2   :  { %v156_v17 = vadd.f32 %v180_v13, %v147_v16  ;;  %159 = vst.msk [vmem:[#allocation8 + $0x8] sm:$0xff] %vm47_vm0, %v157_v15 }
  0xf4   :  { %158 = vst.msk [vmem:[#allocation8] sm:$0xff] %vm47_vm0, %v156_v17 }
  0xf5   :  { %255 = shalt.err (!%p252_p0)
}
  0xf6   :  { %171 = dma.vmem_to_hbm [thread:$0]  %s166_s25, 256, %s328_s3, [#allocation5], %s271_s15, %s271_s15, %s272_s16  }
  0xf7   :  { %268 = dma.done.wait [#allocation5], 256  }
  0xf8   :  { %269 = vsyncadd [#allocation5], 4294967040 }
  0xf9   :  { %175 = vsyncpa [#allocation4], 1 }
  0xfa   :  { %176 = vsyncpa [#allocation7], 1 }
  0xfb   :  { %177 = vsyncpa [#allocation5], 1 }

</bundles_post_ra>
